<compile_context>
chip_gen: v7x
topology: tpu7x:2x2x1
jax: 0.10.0
libtpu: 0.0.40
codegen_flags: <defaults>
</compile_context>

<pallas_src>
import functools

import jax
import jax.numpy as jnp
from jax.experimental import pallas as pl
from jax.experimental.pallas import tpu as pltpu


def _round_up(x, m):
    return (x + m - 1) // m * m


def _cdiv(a, b):
    return -(-a // b)


# -----------------------------------------------------------------------------
# Pallas kernel: per-scale MXU contraction + fused scale_preds Linear + sigmoid
# -----------------------------------------------------------------------------
def _ttc_head_kernel(tar_ref, ref_ref, w_ref, b_ref, out_ref, *, S, D):
    # tar_ref: [TK, D]     bf16 target crop features (D = C*G*G, lane-dense)
    # ref_ref: [TK, S*D]   bf16 reference crop features, S scales on the lane axis
    # w_ref  : [S*D, S]    f32, w[s*D+d, o] = scale_preds.weight[o, s] / GG
    # b_ref  : [1, S]      f32 scale_preds bias
    # out_ref: [TK, S]     f32 sigmoid(scale_preds(sim))
    tar = tar_ref[...].astype(jnp.float32)            # upcast once (v5e: no bf16 VPU)
    acc = jnp.zeros(out_ref.shape, jnp.float32)       # [TK, S]
    for s in range(S):                                # static unroll over scales
        # Whole-vreg lane slice (D == 128 in the intended configuration).
        ref_s = ref_ref[:, s * D:(s + 1) * D].astype(jnp.float32)
        # MXU contraction over the lane-dense D axis; the scale_preds Linear and
        # the 1/GG mean are folded into w_ref, so no XLU cross-lane reduce and no
        # degenerate [TK,S]x[S,S] matmul remain.
        acc = acc + jnp.dot(tar * ref_s, w_ref[s * D:(s + 1) * D, :],
                            preferred_element_type=jnp.float32)
    # Bias + sigmoid on the S valid lanes only (no padding to 128); exp rides the EUP.
    out_ref[...] = jax.nn.sigmoid(acc + b_ref[...])


def ttc_head_pallas(tar_feat, ref_feat, w_lin, b_lin, *, gg):
    """tar_feat: [K, D], ref_feat: [K, S, D], w_lin: [S, S] (out,in), b_lin: [S]."""
    K, D = tar_feat.shape
    S = ref_feat.shape[1]

    # bf16 HBM-resident kernel inputs; lane-dense [K, S*D] layout for ref.
    tar_bf = tar_feat.astype(jnp.bfloat16)
    ref2d = ref_feat.astype(jnp.bfloat16).reshape(K, S * D)

    # Fold the 1/GG spatial mean into the transposed weight and broadcast it
    # over the D contraction rows: wbig[s*D + d, o] = W[o, s] / GG.
    wt = (jnp.transpose(w_lin) / jnp.float32(gg)).astype(jnp.float32)       # [S_in, S_out]
    wbig = jnp.broadcast_to(wt[:, None, :], (S, D, S)).reshape(S * D, S)    # [S*D, S]
    b2d = b_lin.reshape(1, S).astype(jnp.float32)

    # --- Per-generation VMEM-aware K-tile sizing -----------------------------
    try:
        vmem_cap = int(getattr(pltpu.get_tpu_info(), "vmem_capacity_bytes",
                               64 * 1024 * 1024))
    except Exception:
        vmem_cap = 64 * 1024 * 1024                    # v7x-conservative fallback

    # Double-buffered pipeline bytes per K row: bf16 tar + bf16 ref + f32 out.
    per_row = 2 * (2 * D + 2 * S * D + 4 * S)
    sizing_budget = max(min(vmem_cap // 4, 32 * 1024 * 1024) - (2 << 20), 1 << 20)
    tk = max(8, min(sizing_budget // per_row, 2048) // 8 * 8)
    kp8 = _round_up(K, 8)
    if kp8 > 8:
        # Keep >= 2 grid steps so "parallel" can shard K across v7x's 2 TCs.
        tk = min(tk, _round_up(_cdiv(kp8, 2), 8))
    tk = min(tk, kp8)

    kp = _round_up(K, tk)
    if kp != K:
        tar_bf = jnp.pad(tar_bf, ((0, kp - K), (0, 0)))
        ref2d = jnp.pad(ref2d, ((0, kp - K), (0, 0)))

    vmem_limit = int(max(min(vmem_cap // 2, 64 * 1024 * 1024), 32 * 1024 * 1024))

    cost = pl.CostEstimate(
        flops=2 * kp * S * D * S + kp * S * D,
        transcendentals=kp * S,
        bytes_accessed=2 * (kp * D + kp * S * D) + 4 * (S * D * S + S + kp * S),
    )

    out = pl.pallas_call(
        functools.partial(_ttc_head_kernel, S=S, D=D),
        out_shape=jax.ShapeDtypeStruct((kp, S), jnp.float32),
        grid=(kp // tk,),
        in_specs=[
            pl.BlockSpec((tk, D), lambda i: (i, 0)),
            pl.BlockSpec((tk, S * D), lambda i: (i, 0)),
            pl.BlockSpec((S * D, S), lambda i: (0, 0)),
            pl.BlockSpec((1, S), lambda i: (0, 0)),
        ],
        out_specs=pl.BlockSpec((tk, S), lambda i: (i, 0)),
        compiler_params=pltpu.CompilerParams(
            dimension_semantics=("parallel",),          # megacore-shardable on v7x
            vmem_limit_bytes=vmem_limit),
        cost_estimate=cost,
    )(tar_bf, ref2d, wbig, b2d)

    return out[:K]


# -----------------------------------------------------------------------------
# Plain-JAX glue: scale list, box multi-scaling, roi_align
# -----------------------------------------------------------------------------
def get_scale_list(min_scale, max_scale, S):
    return jnp.linspace(min_scale, max_scale, S)


def _to_align_space(center_boxes, hw_boxes, scale_list, H, W):
    # center_boxes, hw_boxes: [K, 4] (x1, y1, x2, y2); scale_list: [ns]
    K = center_boxes.shape[0]
    ns = scale_list.shape[-1]
    box_xx = jnp.array([-0.5 * W, 0.5 * W], jnp.float32)[None, None, :]   # [1,1,2]
    box_yy = jnp.array([-0.5 * H, 0.5 * H], jnp.float32)[None, None, :]
    s = jnp.broadcast_to(scale_list.reshape(1, ns, 1), (K, ns, 2))
    box_xx = s * box_xx
    box_yy = s * box_yy
    wh = hw_boxes[:, 2:] - hw_boxes[:, :2]                                # [K,2]
    wh = jnp.broadcast_to(wh[:, None, :], (K, ns, 2))
    box_xx = box_xx * wh[:, :, 0:1] / W
    box_yy = box_yy * wh[:, :, 1:2] / H
    cx = (center_boxes[:, 2] + center_boxes[:, 0]) / 2.0
    cy = (center_boxes[:, 3] + center_boxes[:, 1]) / 2.0
    box_xx = box_xx + cx[:, None, None]
    box_yy = box_yy + cy[:, None, None]
    return jnp.stack(
        [box_xx[:, :, 0], box_yy[:, :, 0], box_xx[:, :, 1], box_yy[:, :, 1]],
        axis=-1)                                                          # [K, ns, 4]


def boxes_sample(ref_boxes, tar_boxes, scale_list, H, W, scale_number):
    batch_index = tar_boxes[:, :1]                       # [K, 1]
    tarb = tar_boxes[:, 1:]
    refb = ref_boxes[:, 1:]
    scaled_ref = _to_align_space(refb, tarb, scale_list, H, W).reshape(-1, 4)
    scaled_tar = _to_align_space(tarb, tarb, jnp.array([1.0], jnp.float32),
                                 H, W).reshape(-1, 4)
    ref_align = jnp.concatenate(
        [jnp.tile(batch_index, (1, scale_number)).reshape(-1, 1), scaled_ref],
        axis=-1)                                         # [K*S, 5]
    tar_align = jnp.concatenate([batch_index, scaled_tar], axis=-1)   # [K, 5]
    return ref_align, tar_align


def _bilinear_sample(img, ys, xs):
    # img: [C, H, W]; ys, xs: [P] flat sample coordinates
    C, H, W = img.shape
    valid = (ys >= -1.0) & (ys <= H) & (xs >= -1.0) & (xs <= W)
    y = jnp.clip(ys, 0.0, H - 1.0)
    x = jnp.clip(xs, 0.0, W - 1.0)
    y0 = jnp.floor(y).astype(jnp.int32)
    x0 = jnp.floor(x).astype(jnp.int32)
    y1 = jnp.minimum(y0 + 1, H - 1)
    x1 = jnp.minimum(x0 + 1, W - 1)
    ly = y - y0.astype(y.dtype)
    lx = x - x0.astype(x.dtype)
    hy, hx = 1.0 - ly, 1.0 - lx
    v00 = img[:, y0, x0]
    v01 = img[:, y0, x1]
    v10 = img[:, y1, x0]
    v11 = img[:, y1, x1]
    val = hy * hx * v00 + hy * lx * v01 + ly * hx * v10 + ly * lx * v11
    return val * valid[None, :].astype(val.dtype)


def roi_align_jax(features, boxes, output_size, sampling_ratio=2,
                  spatial_scale=1.0, aligned=False):
    """torchvision-style roi_align. features: [N,C,H,W], boxes: [R,5]."""
    # TODO(synk): torchvision's adaptive sampling_ratio=-1 is approximated with a
    #             fixed sampling_ratio=2 to keep shapes static.
    N, C, H, W = features.shape
    Gh, Gw = output_size
    sr = sampling_ratio
    offset = 0.5 if aligned else 0.0
    bidx = boxes[:, 0].astype(jnp.int32)
    x1 = boxes[:, 1] * spatial_scale - offset
    y1 = boxes[:, 2] * spatial_scale - offset
    x2 = boxes[:, 3] * spatial_scale - offset
    y2 = boxes[:, 4] * spatial_scale - offset
    roi_w = x2 - x1
    roi_h = y2 - y1
    if not aligned:
        roi_w = jnp.maximum(roi_w, 1.0)
        roi_h = jnp.maximum(roi_h, 1.0)
    bin_w = roi_w / Gw
    bin_h = roi_h / Gh
    frac = (jnp.arange(sr, dtype=jnp.float32) + 0.5) / sr            # [sr]
    gy = jnp.arange(Gh, dtype=jnp.float32)[:, None] + frac[None, :]  # [Gh, sr]
    gx = jnp.arange(Gw, dtype=jnp.float32)[:, None] + frac[None, :]  # [Gw, sr]
    ys = y1[:, None, None] + gy[None] * bin_h[:, None, None]         # [R, Gh, sr]
    xs = x1[:, None, None] + gx[None] * bin_w[:, None, None]         # [R, Gw, sr]

    def per_roi(b, yr, xr):
        img = features[b]                                            # [C, H, W]
        yy = jnp.broadcast_to(yr.reshape(Gh * sr, 1),
                              (Gh * sr, Gw * sr)).reshape(-1)
        xx = jnp.broadcast_to(xr.reshape(1, Gw * sr),
                              (Gh * sr, Gw * sr)).reshape(-1)
        vals = _bilinear_sample(img, yy, xx)                         # [C, P]
        vals = vals.reshape(C, Gh, sr, Gw, sr)
        return vals.mean(axis=(2, 4))                                # [C, Gh, Gw]

    return jax.vmap(per_roi)(bidx, ys, xs)                           # [R, C, Gh, Gw]


# -----------------------------------------------------------------------------
# TTCHead forward (inference path: shift=False, normed_box=False)
# -----------------------------------------------------------------------------
def ttc_head_forward(xin, tar_boxes, ref_boxes, w_lin, b_lin, *,
                     scale_number=10, grid_size=4,
                     min_scale=0.8, max_scale=1.2):
    # TODO(synk): training branch (BCEWithLogitsLoss / gt_to_one_hot) and the
    #             shift=True path are not implemented (inference only).
    # TODO(synk): next fusion target is a PrefetchScalarGridSpec kernel that
    #             DMAs per-box feature rows and fuses roi_align + contraction,
    #             eliminating the [K,S,C,G,G] HBM round-trip.
    C, H, W = xin.shape[-3:]
    G, S = grid_size, scale_number
    K = tar_boxes.shape[0]

    scale_list = get_scale_list(min_scale, max_scale, S)
    ref_align, tar_align = boxes_sample(ref_boxes, tar_boxes, scale_list,
                                        H, W, S)

    # Cast to bf16 immediately after roi_align so HBM-resident intermediates
    # feeding the (mem-bound) kernel are half-width.
    tar_features = roi_align_jax(xin[1::2], tar_align, (G, G)).astype(jnp.bfloat16)
    ref_features = roi_align_jax(xin[0::2], ref_align, (G, G)).astype(jnp.bfloat16)

    # Flatten channel+spatial into one lane-dense reduction dim D = C*G*G.
    D = C * G * G
    tar_feat = tar_features.reshape(K, D)                            # [K, D]
    ref_feat = ref_features.reshape(K, S, D)                         # [K, S, D]

    preds = ttc_head_pallas(tar_feat, ref_feat, w_lin, b_lin, gg=G * G)  # [K, S]
    return preds, scale_list, None


# -----------------------------------------------------------------------------
# Main
# -----------------------------------------------------------------------------
if __name__ == "__main__":
    # Small, deterministic shapes.  D = C*G*G = 8*16 = 128 (lane-dense).
    N, C, H, W = 2, 8, 16, 16        # 2 frames = 1 (ref, tar) pair
    G, S, K = 4, 10, 3               # grid_size, scale_number, num boxes

    key = jax.random.PRNGKey(0)
    k_feat, k_ctr, k_half, k_ref, k_w, k_b = jax.random.split(key, 6)

    xin = jax.random.normal(k_feat, (N, C, H, W), jnp.float32)

    centers = jax.random.uniform(k_ctr, (K, 2), minval=5.0, maxval=11.0)
    halves = jax.random.uniform(k_half, (K, 2), minval=2.0, maxval=4.0)
    jitter = jax.random.uniform(k_ref, (K, 2), minval=-1.0, maxval=1.0)
    bidx = jnp.zeros((K, 1), jnp.float32)
    tar_boxes = jnp.concatenate([bidx, centers - halves, centers + halves], axis=-1)
    ref_boxes = jnp.concatenate(
        [bidx, centers + jitter - halves * 1.05, centers + jitter + halves * 1.05],
        axis=-1)

    # scale_preds = nn.Linear(S, S): deterministic synthetic params
    w_lin = jax.random.normal(k_w, (S, S), jnp.float32) * 0.1
    b_lin = jax.random.normal(k_b, (S,), jnp.float32) * 0.1

    preds, scale_list, _ = jax.jit(
        functools.partial(ttc_head_forward, scale_number=S, grid_size=G)
    )(xin, tar_boxes, ref_boxes, w_lin, b_lin)
    jax.block_until_ready(preds)

    # Pure-JAX references for sanity checks.
    ref_align, tar_align = boxes_sample(ref_boxes, tar_boxes, scale_list, H, W, S)
    tf32 = roi_align_jax(xin[1::2], tar_align, (G, G)).reshape(K, C * G * G)
    rf32 = roi_align_jax(xin[0::2], ref_align, (G, G)).reshape(K, S, C * G * G)

    # (a) bf16-matched reference: same rounded inputs as the kernel, f32 math.
    tf_bf = tf32.astype(jnp.bfloat16).astype(jnp.float32)
    rf_bf = rf32.astype(jnp.bfloat16).astype(jnp.float32)
    sim_bf = jnp.sum(tf_bf[:, None, :] * rf_bf, axis=-1) / float(G * G)
    ref_out_bf = jax.nn.sigmoid(sim_bf @ w_lin.T + b_lin)

    # (b) full-f32 reference of the module math (loose tolerance due to bf16 DMA).
    sim_f32 = jnp.sum(tf32[:, None, :] * rf32, axis=-1) / float(G * G)
    ref_out_f32 = jax.nn.sigmoid(sim_f32 @ w_lin.T + b_lin)

    assert preds.shape == (K, S)
    assert jnp.allclose(preds, ref_out_bf, atol=2e-3, rtol=2e-3)
    assert jnp.allclose(preds, ref_out_f32, atol=2e-2, rtol=2e-2)

    print("KERNEL_OK")
</pallas_src>

<mosaic_0001>
module attributes {stable_mosaic.version = 11 : i64} {
  func.func private @main(%arg0: i32) attributes {dimension_semantics = [#tpu.dimension_semantics<core_parallel>], iteration_bounds = array<i64: 2>, tpu.core_type = #tpu.core_type<sc_scalar_subcore>, window_params = []} {
    return
  }
}

module attributes {stable_mosaic.version = 11 : i64} {
  func.func private @main(%arg0: i32) attributes {dimension_semantics = [#tpu.dimension_semantics<core_parallel>], iteration_bounds = array<i64: 2>, tpu.core_type = #tpu.core_type<sc_scalar_subcore>, window_params = []} {
    return
  }
}

module attributes {stable_mosaic.version = 11 : i64} {
  func.func @_ttc_head_kernel(%arg0: i32, %arg1: memref<8x128xbf16, #tpu.memory_space<vmem>>, %arg2: memref<8x1280xbf16, #tpu.memory_space<vmem>>, %arg3: memref<1280x10xf32, #tpu.memory_space<vmem>>, %arg4: memref<1x10xf32, #tpu.memory_space<vmem>>, %arg5: memref<8x10xf32, #tpu.memory_space<vmem>>) attributes {dimension_semantics = [#tpu.dimension_semantics<parallel>], iteration_bounds = array<i64: 1>, scalar_prefetch = 0 : i64, scratch_operands = 0 : i64, tpu.core_type = #tpu.core_type<tc>, window_params = [{transform_indices = @transform_0, window_bounds = array<i64: 8, 128>}, {transform_indices = @transform_1, window_bounds = array<i64: 8, 1280>}, {pipeline_mode = #tpu.pipeline_mode<synchronous>, transform_indices = @transform_2, window_bounds = array<i64: 1280, 10>}, {pipeline_mode = #tpu.pipeline_mode<synchronous>, transform_indices = @transform_3, window_bounds = array<i64: 1, 10>}, {transform_indices = @transform_4, window_bounds = array<i64: 8, 10>}]} {
    %c0 = arith.constant 0 : index
    %c0_0 = arith.constant 0 : index
    %0 = vector.load %arg1[%c0, %c0_0] : memref<8x128xbf16, #tpu.memory_space<vmem>>, vector<8x128xbf16>
    %1 = arith.extf %0 : vector<8x128xbf16> to vector<8x128xf32>
    %cst = arith.constant 0.000000e+00 : f32
    %2 = vector.broadcast %cst : f32 to vector<8x10xf32>
    %c0_1 = arith.constant 0 : index
    %c0_2 = arith.constant 0 : index
    %3 = vector.load %arg2[%c0_1, %c0_2] : memref<8x1280xbf16, #tpu.memory_space<vmem>>, vector<8x128xbf16>
    %4 = arith.extf %3 : vector<8x128xbf16> to vector<8x128xf32>
    %5 = arith.mulf %1, %4 : vector<8x128xf32>
    %c0_3 = arith.constant 0 : index
    %c0_4 = arith.constant 0 : index
    %6 = vector.load %arg3[%c0_3, %c0_4] : memref<1280x10xf32, #tpu.memory_space<vmem>>, vector<128x10xf32>
    %cst_5 = arith.constant dense<0.000000e+00> : vector<8x10xf32>
    %7 = tpu.matmul %5, %6, %cst_5 {dimension_numbers = #tpu.dot_dimension_numbers<[1], [0], [0], [1], [0, 0, 1, 1], [], []>} : vector<8x128xf32>, vector<128x10xf32>, vector<8x10xf32> -> vector<8x10xf32>
    %8 = arith.addf %2, %7 : vector<8x10xf32>
    %c0_6 = arith.constant 0 : index
    %c128 = arith.constant 128 : index
    %9 = vector.load %arg2[%c0_6, %c128] : memref<8x1280xbf16, #tpu.memory_space<vmem>>, vector<8x128xbf16>
    %10 = arith.extf %9 : vector<8x128xbf16> to vector<8x128xf32>
    %11 = arith.mulf %1, %10 : vector<8x128xf32>
    %c128_7 = arith.constant 128 : index
    %c0_8 = arith.constant 0 : index
    %12 = vector.load %arg3[%c128_7, %c0_8] : memref<1280x10xf32, #tpu.memory_space<vmem>>, vector<128x10xf32>
    %cst_9 = arith.constant dense<0.000000e+00> : vector<8x10xf32>
    %13 = tpu.matmul %11, %12, %cst_9 {dimension_numbers = #tpu.dot_dimension_numbers<[1], [0], [0], [1], [0, 0, 1, 1], [], []>} : vector<8x128xf32>, vector<128x10xf32>, vector<8x10xf32> -> vector<8x10xf32>
    %14 = arith.addf %8, %13 : vector<8x10xf32>
    %c0_10 = arith.constant 0 : index
    %c256 = arith.constant 256 : index
    %15 = vector.load %arg2[%c0_10, %c256] : memref<8x1280xbf16, #tpu.memory_space<vmem>>, vector<8x128xbf16>
    %16 = arith.extf %15 : vector<8x128xbf16> to vector<8x128xf32>
    %17 = arith.mulf %1, %16 : vector<8x128xf32>
    %c256_11 = arith.constant 256 : index
    %c0_12 = arith.constant 0 : index
    %18 = vector.load %arg3[%c256_11, %c0_12] : memref<1280x10xf32, #tpu.memory_space<vmem>>, vector<128x10xf32>
    %cst_13 = arith.constant dense<0.000000e+00> : vector<8x10xf32>
    %19 = tpu.matmul %17, %18, %cst_13 {dimension_numbers = #tpu.dot_dimension_numbers<[1], [0], [0], [1], [0, 0, 1, 1], [], []>} : vector<8x128xf32>, vector<128x10xf32>, vector<8x10xf32> -> vector<8x10xf32>
    %20 = arith.addf %14, %19 : vector<8x10xf32>
    %c0_14 = arith.constant 0 : index
    %c384 = arith.constant 384 : index
    %21 = vector.load %arg2[%c0_14, %c384] : memref<8x1280xbf16, #tpu.memory_space<vmem>>, vector<8x128xbf16>
    %22 = arith.extf %21 : vector<8x128xbf16> to vector<8x128xf32>
    %23 = arith.mulf %1, %22 : vector<8x128xf32>
    %c384_15 = arith.constant 384 : index
    %c0_16 = arith.constant 0 : index
    %24 = vector.load %arg3[%c384_15, %c0_16] : memref<1280x10xf32, #tpu.memory_space<vmem>>, vector<128x10xf32>
    %cst_17 = arith.constant dense<0.000000e+00> : vector<8x10xf32>
    %25 = tpu.matmul %23, %24, %cst_17 {dimension_numbers = #tpu.dot_dimension_numbers<[1], [0], [0], [1], [0, 0, 1, 1], [], []>} : vector<8x128xf32>, vector<128x10xf32>, vector<8x10xf32> -> vector<8x10xf32>
    %26 = arith.addf %20, %25 : vector<8x10xf32>
    %c0_18 = arith.constant 0 : index
    %c512 = arith.constant 512 : index
    %27 = vector.load %arg2[%c0_18, %c512] : memref<8x1280xbf16, #tpu.memory_space<vmem>>, vector<8x128xbf16>
    %28 = arith.extf %27 : vector<8x128xbf16> to vector<8x128xf32>
    %29 = arith.mulf %1, %28 : vector<8x128xf32>
    %c512_19 = arith.constant 512 : index
    %c0_20 = arith.constant 0 : index
    %30 = vector.load %arg3[%c512_19, %c0_20] : memref<1280x10xf32, #tpu.memory_space<vmem>>, vector<128x10xf32>
    %cst_21 = arith.constant dense<0.000000e+00> : vector<8x10xf32>
    %31 = tpu.matmul %29, %30, %cst_21 {dimension_numbers = #tpu.dot_dimension_numbers<[1], [0], [0], [1], [0, 0, 1, 1], [], []>} : vector<8x128xf32>, vector<128x10xf32>, vector<8x10xf32> -> vector<8x10xf32>
    %32 = arith.addf %26, %31 : vector<8x10xf32>
    %c0_22 = arith.constant 0 : index
    %c640 = arith.constant 640 : index
    %33 = vector.load %arg2[%c0_22, %c640] : memref<8x1280xbf16, #tpu.memory_space<vmem>>, vector<8x128xbf16>
    %34 = arith.extf %33 : vector<8x128xbf16> to vector<8x128xf32>
    %35 = arith.mulf %1, %34 : vector<8x128xf32>
    %c640_23 = arith.constant 640 : index
    %c0_24 = arith.constant 0 : index
    %36 = vector.load %arg3[%c640_23, %c0_24] : memref<1280x10xf32, #tpu.memory_space<vmem>>, vector<128x10xf32>
    %cst_25 = arith.constant dense<0.000000e+00> : vector<8x10xf32>
    %37 = tpu.matmul %35, %36, %cst_25 {dimension_numbers = #tpu.dot_dimension_numbers<[1], [0], [0], [1], [0, 0, 1, 1], [], []>} : vector<8x128xf32>, vector<128x10xf32>, vector<8x10xf32> -> vector<8x10xf32>
    %38 = arith.addf %32, %37 : vector<8x10xf32>
    %c0_26 = arith.constant 0 : index
    %c768 = arith.constant 768 : index
    %39 = vector.load %arg2[%c0_26, %c768] : memref<8x1280xbf16, #tpu.memory_space<vmem>>, vector<8x128xbf16>
    %40 = arith.extf %39 : vector<8x128xbf16> to vector<8x128xf32>
    %41 = arith.mulf %1, %40 : vector<8x128xf32>
    %c768_27 = arith.constant 768 : index
    %c0_28 = arith.constant 0 : index
    %42 = vector.load %arg3[%c768_27, %c0_28] : memref<1280x10xf32, #tpu.memory_space<vmem>>, vector<128x10xf32>
    %cst_29 = arith.constant dense<0.000000e+00> : vector<8x10xf32>
    %43 = tpu.matmul %41, %42, %cst_29 {dimension_numbers = #tpu.dot_dimension_numbers<[1], [0], [0], [1], [0, 0, 1, 1], [], []>} : vector<8x128xf32>, vector<128x10xf32>, vector<8x10xf32> -> vector<8x10xf32>
    %44 = arith.addf %38, %43 : vector<8x10xf32>
    %c0_30 = arith.constant 0 : index
    %c896 = arith.constant 896 : index
    %45 = vector.load %arg2[%c0_30, %c896] : memref<8x1280xbf16, #tpu.memory_space<vmem>>, vector<8x128xbf16>
    %46 = arith.extf %45 : vector<8x128xbf16> to vector<8x128xf32>
    %47 = arith.mulf %1, %46 : vector<8x128xf32>
    %c896_31 = arith.constant 896 : index
    %c0_32 = arith.constant 0 : index
    %48 = vector.load %arg3[%c896_31, %c0_32] : memref<1280x10xf32, #tpu.memory_space<vmem>>, vector<128x10xf32>
    %cst_33 = arith.constant dense<0.000000e+00> : vector<8x10xf32>
    %49 = tpu.matmul %47, %48, %cst_33 {dimension_numbers = #tpu.dot_dimension_numbers<[1], [0], [0], [1], [0, 0, 1, 1], [], []>} : vector<8x128xf32>, vector<128x10xf32>, vector<8x10xf32> -> vector<8x10xf32>
    %50 = arith.addf %44, %49 : vector<8x10xf32>
    %c0_34 = arith.constant 0 : index
    %c1024 = arith.constant 1024 : index
    %51 = vector.load %arg2[%c0_34, %c1024] : memref<8x1280xbf16, #tpu.memory_space<vmem>>, vector<8x128xbf16>
    %52 = arith.extf %51 : vector<8x128xbf16> to vector<8x128xf32>
    %53 = arith.mulf %1, %52 : vector<8x128xf32>
    %c1024_35 = arith.constant 1024 : index
    %c0_36 = arith.constant 0 : index
    %54 = vector.load %arg3[%c1024_35, %c0_36] : memref<1280x10xf32, #tpu.memory_space<vmem>>, vector<128x10xf32>
    %cst_37 = arith.constant dense<0.000000e+00> : vector<8x10xf32>
    %55 = tpu.matmul %53, %54, %cst_37 {dimension_numbers = #tpu.dot_dimension_numbers<[1], [0], [0], [1], [0, 0, 1, 1], [], []>} : vector<8x128xf32>, vector<128x10xf32>, vector<8x10xf32> -> vector<8x10xf32>
    %56 = arith.addf %50, %55 : vector<8x10xf32>
    %c0_38 = arith.constant 0 : index
    %c1152 = arith.constant 1152 : index
    %57 = vector.load %arg2[%c0_38, %c1152] : memref<8x1280xbf16, #tpu.memory_space<vmem>>, vector<8x128xbf16>
    %58 = arith.extf %57 : vector<8x128xbf16> to vector<8x128xf32>
    %59 = arith.mulf %1, %58 : vector<8x128xf32>
    %c1152_39 = arith.constant 1152 : index
    %c0_40 = arith.constant 0 : index
    %60 = vector.load %arg3[%c1152_39, %c0_40] : memref<1280x10xf32, #tpu.memory_space<vmem>>, vector<128x10xf32>
    %cst_41 = arith.constant dense<0.000000e+00> : vector<8x10xf32>
    %61 = tpu.matmul %59, %60, %cst_41 {dimension_numbers = #tpu.dot_dimension_numbers<[1], [0], [0], [1], [0, 0, 1, 1], [], []>} : vector<8x128xf32>, vector<128x10xf32>, vector<8x10xf32> -> vector<8x10xf32>
    %62 = arith.addf %56, %61 : vector<8x10xf32>
    %c0_42 = arith.constant 0 : index
    %c0_43 = arith.constant 0 : index
    %63 = vector.load %arg4[%c0_42, %c0_43] : memref<1x10xf32, #tpu.memory_space<vmem>>, vector<1x10xf32>
    %64 = vector.broadcast %63 : vector<1x10xf32> to vector<8x10xf32>
    %65 = arith.addf %62, %64 : vector<8x10xf32>
    %66 = arith.negf %65 : vector<8x10xf32>
    %67 = math.exp %66 : vector<8x10xf32>
    %cst_44 = arith.constant 1.000000e+00 : f32
    %68 = vector.broadcast %cst_44 : f32 to vector<8x10xf32>
    %69 = arith.addf %68, %67 : vector<8x10xf32>
    %70 = arith.divf %68, %69 : vector<8x10xf32>
    %c0_45 = arith.constant 0 : index
    %c0_46 = arith.constant 0 : index
    %71 = vector.load %arg5[%c0_45, %c0_46] : memref<8x10xf32, #tpu.memory_space<vmem>>, vector<8x10xf32>
    tpu.vector_store %arg5[%c0_45, %c0_46], %70 {strides = array<i32>} : memref<8x10xf32, #tpu.memory_space<vmem>>, vector<8x10xf32>,
    return
  }
  func.func @transform_0(%arg0: i32) -> (i32, i32) {
    %c0_i32 = arith.constant 0 : i32
    %c0_i32_0 = arith.constant 0 : i32
    return %arg0, %c0_i32 : i32, i32
  }
  func.func @transform_1(%arg0: i32) -> (i32, i32) {
    %c0_i32 = arith.constant 0 : i32
    %c0_i32_0 = arith.constant 0 : i32
    return %arg0, %c0_i32 : i32, i32
  }
  func.func @transform_2(%arg0: i32) -> (i32, i32) {
    %c0_i32 = arith.constant 0 : i32
    %c0_i32_0 = arith.constant 0 : i32
    %c0_i32_1 = arith.constant 0 : i32
    return %c0_i32, %c0_i32_0 : i32, i32
  }
  func.func @transform_3(%arg0: i32) -> (i32, i32) {
    %c0_i32 = arith.constant 0 : i32
    %c0_i32_0 = arith.constant 0 : i32
    %c0_i32_1 = arith.constant 0 : i32
    return %c0_i32, %c0_i32_0 : i32, i32
  }
  func.func @transform_4(%arg0: i32) -> (i32, i32) {
    %c0_i32 = arith.constant 0 : i32
    %c0_i32_0 = arith.constant 0 : i32
    return %arg0, %c0_i32 : i32, i32
  }
}

</mosaic_0001>

<bundles_post_ra>
// kernel: ttc_head_forward.1
= control target key start
LH: loop header
LB: loop body
LE: loop exit
PB: predicated region body
PF: predicated region fallthrough
CT: control target
= control target key end

     0   :  { %v1706_v0 = vmov 0.0|0.0   ;;  %vm1707_vm0 = vmmov 0   ;;  %v1708_v8 = vmov 0.0   ;;  %vm931_vm1 = vcmask 80896   ;;  %s2376_s2 = inlined_call_operand.vmem [shape: f32[1280,10], index: 2, kind: input, shape index: {}]   ;;  %s2377_s0 = inlined_call_operand.vmem [shape: bf16[8,128], index: 0, kind: input, shape index: {}]   ;;  %s2378_s1 = inlined_call_operand.vmem [shape: bf16[8,1280], index: 1, kind: input, shape index: {}]   ;;  %s2379_s3 = inlined_call_operand.vmem [shape: f32[1,10], index: 3, kind: input, shape index: {}]   ;;  %s2380_s4 = inlined_call_operand.vmem [shape: f32[8,10], index: 4, kind: output, shape index: {}]  }
   0x1   :  { %1459 = vmatprep.subr.bf16.mxu0 %v1706_v0  ;;  %v41_v1 = vld [vmem:[%s2376_s2 + $0x80] sm:$0xff]  ;;  %v42_v2 = vld [vmem:[%s2376_s2 + $0x88] sm:$0xff]  ;;  %1483 = vmatprep.subr.bf16.mxu1 %v1706_v0  ;;  %v43_v6 = vld [vmem:[%s2376_s2 + $0x90] sm:$0xff] }
   0x2   :  { %v22_v3 = vld [vmem:[%s2376_s2] sm:$0xff]  ;;  %v1460_v4 = vpack.c.bf16 %v42_v2, %v41_v1  ;;  %v23_v5 = vld [vmem:[%s2376_s2 + $0x8] sm:$0xff]  ;;  %v44_v7 = vld [vmem:[%s2376_s2 + $0x98] sm:$0xff]  ;;  %1141 = vmatprep.mubr.msk.f32.mxu0 %vm1707_vm0, %v1708_v8  ;;  %1176 = vmatprep.mubr.msk.f32.mxu1 %vm1707_vm0, %v1708_v8 }
   0x3   :  { %v1484_v9 = vpack.c.bf16 %v23_v5, %v22_v3  ;;  %v24_v10 = vld [vmem:[%s2376_s2 + $0x10] sm:$0xff]  ;;  %v25_v11 = vld [vmem:[%s2376_s2 + $0x18] sm:$0xff]  ;;  %v1463_v12 = vpack.c.bf16 %v44_v7, %v43_v6  ;;  %v45_v14 = vld [vmem:[%s2376_s2 + $0xa0] sm:$0xff] }
   0x4   :  { %1461 = vmatpush3.bf16.msra.mxu0 %v1460_v4  ;;  %v1487_v13 = vpack.c.bf16 %v25_v11, %v24_v10  ;;  %v46_v15 = vld [vmem:[%s2376_s2 + $0xa8] sm:$0xff]  ;;  %v26_v16 = vld [vmem:[%s2376_s2 + $0x20] sm:$0xff]  ;;  %v47_v20 = vld [vmem:[%s2376_s2 + $0xb0] sm:$0xff] }
   0x5   :  { %1485 = vmatpush3.bf16.msra.mxu1 %v1484_v9  ;;  %1462 = vmatprep.subr.bf16.mxu0 %v1706_v0  ;;  %v27_v17 = vld [vmem:[%s2376_s2 + $0x28] sm:$0xff]  ;;  %v1466_v18 = vpack.c.bf16 %v46_v15, %v45_v14  ;;  %v48_v21 = vld [vmem:[%s2376_s2 + $0xb8] sm:$0xff]  ;;  %v28_v22 = vld [vmem:[%s2376_s2 + $0x30] sm:$0xff] }
   0x6   :  { %1486 = vmatprep.subr.bf16.mxu1 %v1706_v0  ;;  %v1490_v19 = vpack.c.bf16 %v27_v17, %v26_v16  ;;  %v29_v23 = vld [vmem:[%s2376_s2 + $0x38] sm:$0xff]  ;;  %v1469_v24 = vpack.c.bf16 %v48_v21, %v47_v20  ;;  %v49_v26 = vld [vmem:[%s2376_s2 + $0xc0] sm:$0xff]  ;;  %v50_v27 = vld [vmem:[%s2376_s2 + $0xc8] sm:$0xff] }
   0x7   :  { %v1493_v25 = vpack.c.bf16 %v29_v23, %v28_v22  ;;  %v30_v28 = vld [vmem:[%s2376_s2 + $0x40] sm:$0xff]  ;;  %v31_v29 = vld [vmem:[%s2376_s2 + $0x48] sm:$0xff]  ;;  %v1472_v30 = vpack.c.bf16 %v50_v27, %v49_v26  ;;  %v51_v32 = vld [vmem:[%s2376_s2 + $0xd0] sm:$0xff] }
   0x8   :  { %1464 = vmatpush3.bf16.msra.mxu0 %v1463_v12  ;;  %v1496_v31 = vpack.c.bf16 %v31_v29, %v30_v28  ;;  %v52_v33 = vld [vmem:[%s2376_s2 + $0xd8] sm:$0xff]  ;;  %v32_v34 = vld [vmem:[%s2376_s2 + $0x50] sm:$0xff]  ;;  %v53_v38 = vld [vmem:[%s2376_s2 + $0xe0] sm:$0xff] }
   0x9   :  { %1488 = vmatpush3.bf16.msra.mxu1 %v1487_v13  ;;  %1465 = vmatprep.subr.bf16.mxu0 %v1706_v0  ;;  %v33_v35 = vld [vmem:[%s2376_s2 + $0x58] sm:$0xff]  ;;  %v1475_v36 = vpack.c.bf16 %v52_v33, %v51_v32  ;;  %v54_v39 = vld [vmem:[%s2376_s2 + $0xe8] sm:$0xff]  ;;  %v34_v40 = vld [vmem:[%s2376_s2 + $0x60] sm:$0xff] }
   0xa   :  { %1489 = vmatprep.subr.bf16.mxu1 %v1706_v0  ;;  %v1499_v37 = vpack.c.bf16 %v33_v35, %v32_v34  ;;  %v35_v41 = vld [vmem:[%s2376_s2 + $0x68] sm:$0xff]  ;;  %v1478_v42 = vpack.c.bf16 %v54_v39, %v53_v38  ;;  %v17_v43 = vld [vmem:[%s2377_s0] sm:$0xf]  ;;  %v55_v46 = vld [vmem:[%s2376_s2 + $0xf0] sm:$0xff] }
   0xb   :  { %v1840_v44 = vld [vmem:[%s2378_s1 + $0x4] sm:$0xff]   ;;  %v1502_v45 = vpack.c.bf16 %v35_v41, %v34_v40  ;;  %v56_v47 = vld [vmem:[%s2376_s2 + $0xf8] sm:$0xff]  ;;  %v19_v48 = vld [vmem:[%s2378_s1] sm:$0xf]  ;;  %v1859_v51 = vunpack.c.l.bf16 %v17_v43 }
   0xc   :  { %1467 = vmatpush3.bf16.msra.mxu0 %v1466_v18  ;;  %v36_v49 = vld [vmem:[%s2376_s2 + $0x70] sm:$0xff]  ;;  %v37_v50 = vld [vmem:[%s2376_s2 + $0x78] sm:$0xff]  ;;  %v39_v52 = vunpack.c.l.bf16 %v1840_v44  ;;  %v1481_v53 = vpack.c.bf16 %v56_v47, %v55_v46  ;;  %v20_v54 = vunpack.c.l.bf16 %v19_v48  ;;  %v200_v56 = vld [vmem:[%s2376_s2 + $0x100] sm:$0xff] }
   0xd   :  { %1491 = vmatpush3.bf16.msra.mxu1 %v1490_v19  ;;  %1468 = vmatprep.subr.bf16.mxu0 %v1706_v0  ;;  %v1505_v55 = vpack.c.bf16 %v37_v50, %v36_v49  ;;  %v201_v57 = vld [vmem:[%s2376_s2 + $0x108] sm:$0xff]  ;;  %v290_v58 = vld [vmem:[%s2376_s2 + $0x180] sm:$0xff]  ;;  %v202_v1 = vld [vmem:[%s2376_s2 + $0x110] sm:$0xff] }
   0xe   :  { %1492 = vmatprep.subr.bf16.mxu1 %v1706_v0  ;;  %v291_v59 = vld [vmem:[%s2376_s2 + $0x188] sm:$0xff]  ;;  %v40_v60 = vmul.f32 %v39_v52, %v1859_v51  ;;  %v21_v61 = vmul.f32 %v20_v54, %v1859_v51  ;;  %v1508_v62 = vpack.c.bf16 %v201_v57, %v200_v56  ;;  %v203_v2 = vld [vmem:[%s2376_s2 + $0x118] sm:$0xff]  ;;  %v292_v3 = vld [vmem:[%s2376_s2 + $0x190] sm:$0xff]  ;;  %v198_v57 = vunpack.c.h.bf16 %v1840_v44 }
   0xf   :  { %v1532_v63 = vpack.c.bf16 %v291_v59, %v290_v58  ;;  %v293_v4 = vld [vmem:[%s2376_s2 + $0x198] sm:$0xff]  ;;  %v1511_v6 = vpack.c.bf16 %v203_v2, %v202_v1  ;;  %v204_v11 = vld [vmem:[%s2376_s2 + $0x120] sm:$0xff]  ;;  %v205_v12 = vld [vmem:[%s2376_s2 + $0x128] sm:$0xff] }
  0x10   :  { %1470 = vmatpush3.bf16.msra.mxu0 %v1469_v24  ;;  %v467_v5 = vld [vmem:[%s2378_s1 + $0x14] sm:$0xff]   ;;  %v1535_v10 = vpack.c.bf16 %v293_v4, %v292_v3  ;;  %v294_v13 = vld [vmem:[%s2376_s2 + $0x1a0] sm:$0xff]  ;;  %v295_v14 = vld [vmem:[%s2376_s2 + $0x1a8] sm:$0xff]  ;;  %v1514_v17 = vpack.c.bf16 %v205_v12, %v204_v11  ;;  %v199_v2 = vmul.f32 %v198_v57, %v1859_v51 }
  0x11   :  { %1494 = vmatpush3.bf16.msra.mxu1 %v1493_v25  ;;  %1471 = vmatprep.subr.bf16.mxu0 %v1706_v0  ;;  %v468_v7 = vunpack.c.l.bf16 %v467_v5  ;;  %v558_v9 = vunpack.c.h.bf16 %v467_v5  ;;  %v1538_v18 = vpack.c.bf16 %v295_v14, %v294_v13  ;;  %v206_v19 = vld [vmem:[%s2376_s2 + $0x130] sm:$0xff]  ;;  %v207_v20 = vld [vmem:[%s2376_s2 + $0x138] sm:$0xff]  ;;  %v208_v25 = vld [vmem:[%s2376_s2 + $0x140] sm:$0xff] }
  0x12   :  { %1495 = vmatprep.subr.bf16.mxu1 %v1706_v0  ;;  %v296_v21 = vld [vmem:[%s2376_s2 + $0x1b0] sm:$0xff]  ;;  %v297_v22 = vld [vmem:[%s2376_s2 + $0x1b8] sm:$0xff]  ;;  %v1517_v23 = vpack.c.bf16 %v207_v20, %v206_v19  ;;  %v209_v26 = vld [vmem:[%s2376_s2 + $0x148] sm:$0xff] }
  0x13   :  { %v1912_v15 = vmul.f32 %v468_v7, %v1859_v51  ;;  %v1917_v16 = vmul.f32 %v558_v9, %v1859_v51  ;;  %v1541_v24 = vpack.c.bf16 %v297_v22, %v296_v21  ;;  %v298_v27 = vld [vmem:[%s2376_s2 + $0x1c0] sm:$0xff]  ;;  %v299_v28 = vld [vmem:[%s2376_s2 + $0x1c8] sm:$0xff]  ;;  %v1520_v32 = vpack.c.bf16 %v209_v26, %v208_v25  ;;  %v210_v34 = vld [vmem:[%s2376_s2 + $0x150] sm:$0xff] }
  0x14   :  { %1473 = vmatpush3.bf16.msra.mxu0 %v1472_v30  ;;  %v647_v29 = vld [vmem:[%s2378_s1 + $0x1c] sm:$0xff]   ;;  %v1544_v33 = vpack.c.bf16 %v299_v28, %v298_v27  ;;  %v213_v43 = vld [vmem:[%s2376_s2 + $0x168] sm:$0xff]  ;;  %v827_v48 = vld [vmem:[%s2378_s1 + $0x24] sm:$0xf] }
  0x15   :  { %1497 = vmatpush3.bf16.msra.mxu1 %v1496_v31  ;;  %1474 = vmatprep.subr.bf16.mxu0 %v1706_v0  ;;  %v648_v30 = vunpack.c.l.bf16 %v647_v29  ;;  %v738_v31 = vunpack.c.h.bf16 %v647_v29  ;;  %v211_v35 = vld [vmem:[%s2376_s2 + $0x158] sm:$0xff]  ;;  %v303_v46 = vld [vmem:[%s2376_s2 + $0x1e8] sm:$0xff]  ;;  %v214_v50 = vld [vmem:[%s2376_s2 + $0x170] sm:$0xff]  ;;  %v828_v54 = vunpack.c.l.bf16 %v827_v48 }
  0x16   :  { %1498 = vmatprep.subr.bf16.mxu1 %v1706_v0  ;;  %v301_v38 = vld [vmem:[%s2376_s2 + $0x1d8] sm:$0xff]  ;;  %v1523_v40 = vpack.c.bf16 %v211_v35, %v210_v34  ;;  %v470_v44 = vld [vmem:[%s2376_s2 + $0x280] sm:$0xff]  ;;  %v471_v1 = vld [vmem:[%s2376_s2 + $0x288] sm:$0xff] }
  0x17   :  { %v1968_v39 = vmul.f32 %v738_v31, %v1859_v51  ;;  %v215_v52 = vld [vmem:[%s2376_s2 + $0x178] sm:$0xff]  ;;  %v2008_v58 = vmul.f32 %v828_v54, %v1859_v51  ;;  %v1580_v5 = vpack.c.bf16 %v471_v1, %v470_v44  ;;  %v472_v9 = vld [vmem:[%s2376_s2 + $0x290] sm:$0xff]  ;;  %v384_v13 = vld [vmem:[%s2376_s2 + $0x220] sm:$0xff] }
  0x18   :  { %1476 = vmatpush3.bf16.msra.mxu0 %v1475_v36  ;;  %v1958_v36 = vmul.f32 %v648_v30, %v1859_v51  ;;  %v305_v56 = vld [vmem:[%s2376_s2 + $0x1f8] sm:$0xff]  ;;  %v1529_v59 = vpack.c.bf16 %v215_v52, %v214_v50  ;;  %v385_v14 = vld [vmem:[%s2376_s2 + $0x228] sm:$0xff]  ;;  %v386_v21 = vld [vmem:[%s2376_s2 + $0x230] sm:$0xff] }
  0x19   :  { %1500 = vmatpush3.bf16.msra.mxu1 %v1499_v37  ;;  %1477 = vmatprep.subr.bf16.mxu0 %v1706_v0  ;;  %v300_v37 = vld [vmem:[%s2376_s2 + $0x1d0] sm:$0xff]  ;;  %v383_v7 = vld [vmem:[%s2376_s2 + $0x218] sm:$0xff]  ;;  %v1562_v19 = vpack.c.bf16 %v385_v14, %v384_v13  ;;  %v388_v27 = vld [vmem:[%s2376_s2 + $0x240] sm:$0xff] }
  0x1a   :  { %1501 = vmatprep.subr.bf16.mxu1 %v1706_v0  ;;  %v1547_v41 = vpack.c.bf16 %v301_v38, %v300_v37  ;;  %v387_v22 = vld [vmem:[%s2376_s2 + $0x238] sm:$0xff]  ;;  %v389_v28 = vld [vmem:[%s2376_s2 + $0x248] sm:$0xff]  ;;  %v478_v29 = vld [vmem:[%s2376_s2 + $0x2c0] sm:$0xff] }
  0x1b   :  { %v1565_v25 = vpack.c.bf16 %v387_v22, %v386_v21  ;;  %v479_v30 = vld [vmem:[%s2376_s2 + $0x2c8] sm:$0xff]  ;;  %v1568_v31 = vpack.c.bf16 %v389_v28, %v388_v27  ;;  %v391_v34 = vld [vmem:[%s2376_s2 + $0x258] sm:$0xff]  ;;  %v480_v35 = vld [vmem:[%s2376_s2 + $0x2d0] sm:$0xff] }
  0x1c   :  { %1479 = vmatpush3.bf16.msra.mxu0 %v1478_v42  ;;  %v212_v42 = vld [vmem:[%s2376_s2 + $0x160] sm:$0xff]  ;;  %v481_v37 = vld [vmem:[%s2376_s2 + $0x2d8] sm:$0xff]  ;;  %v394_v48 = vld [vmem:[%s2376_s2 + $0x270] sm:$0xff] }
  0x1d   :  { %1503 = vmatpush3.bf16.msra.mxu1 %v1502_v45  ;;  %1480 = vmatprep.subr.bf16.mxu0 %v1706_v0  ;;  %v302_v45 = vld [vmem:[%s2376_s2 + $0x1e0] sm:$0xff]  ;;  %v1526_v47 = vpack.c.bf16 %v213_v43, %v212_v42  ;;  %v393_v42 = vld [vmem:[%s2376_s2 + $0x268] sm:$0xff]  ;;  %v484_v50 = vld [vmem:[%s2376_s2 + $0x2f0] sm:$0xff] }
  0x1e   :  { %1504 = vmatprep.subr.bf16.mxu1 %v1706_v0  ;;  %v1550_v49 = vpack.c.bf16 %v303_v46, %v302_v45  ;;  %v482_v43 = vld [vmem:[%s2376_s2 + $0x2e0] sm:$0xff]  ;;  %v483_v45 = vld [vmem:[%s2376_s2 + $0x2e8] sm:$0xff]  ;;  %v485_v52 = vld [vmem:[%s2376_s2 + $0x2f8] sm:$0xff] }
  0x1f   :  { %v560_v57 = vld [vmem:[%s2376_s2 + $0x300] sm:$0xff]  ;;  %v562_v44 = vld [vmem:[%s2376_s2 + $0x310] sm:$0xff]  ;;  %v563_v1 = vld [vmem:[%s2376_s2 + $0x318] sm:$0xff] }
  0x20   :  { %1482 = vmatpush3.bf16.msra.mxu0 %v1481_v53  ;;  %v1997_v53 = vld [vmem:[%s2378_s1 + $0xc] sm:$0xff]   ;;  %v657_v14 = vld [vmem:[%s2376_s2 + $0x3b8] sm:$0xff]  ;;  %v658_v21 = vld [vmem:[%s2376_s2 + $0x3c0] sm:$0xff] }
  0x21   :  { %1506 = vmatpush3.bf16.msra.mxu1 %v1505_v55  ;;  %1507 = vmatprep.subr.bf16.mxu0 %v1706_v0  ;;  %v304_v55 = vld [vmem:[%s2376_s2 + $0x1f0] sm:$0xff]  ;;  %v378_v54 = vunpack.c.h.bf16 %v1997_v53  ;;  %v659_v22 = vld [vmem:[%s2376_s2 + $0x3c8] sm:$0xff]  ;;  %v661_v28 = vld [vmem:[%s2376_s2 + $0x3d8] sm:$0xff] }
  0x22   :  { %1531 = vmatprep.subr.bf16.mxu1 %v1706_v0  ;;  %v656_v13 = vld [vmem:[%s2376_s2 + $0x3b0] sm:$0xff] }
  0x23   :  { %1142 = vmatmul.mubr.f32.vlgmr.msra.gmra.mrb[0].mxu0 %v40_v60  ;;  %v288_v60 = vunpack.c.l.bf16 %v1997_v53  ;;  %v650_v53 = vld [vmem:[%s2376_s2 + $0x380] sm:$0xff]  ;;  %v660_v27 = vld [vmem:[%s2376_s2 + $0x3d0] sm:$0xff] }
  0x24   :  { %1177 = vmatmul.mubr.f32.vlgmr.msra.gmra.mrb[0].mxu1 %v21_v61  ;;  %1509 = vmatpush3.bf16.msra.mxu0 %v1508_v62  ;;  %v1553_v61 = vpack.c.bf16 %v305_v56, %v304_v55  ;;  %v380_v62 = vld [vmem:[%s2376_s2 + $0x200] sm:$0xff]  ;;  %v1601_v56 = vpack.c.bf16 %v485_v52, %v484_v50 }
  0x25   :  { %1533 = vmatpush3.bf16.msra.mxu1 %v1532_v63  ;;  %1510 = vmatprep.subr.bf16.mxu0 %v1706_v0  ;;  %v381_v63 = vld [vmem:[%s2376_s2 + $0x208] sm:$0xff]  ;;  %v289_v4 = vmul.f32 %v288_v60, %v1859_v51 }
  0x26   :  { %1534 = vmatprep.subr.bf16.mxu1 %v1706_v0  ;;  %1211 = vmatprep.mubr.msk.f32.mxu0 %vm1707_vm0, %v1708_v8  ;;  %v1556_v3 = vpack.c.bf16 %v381_v63, %v380_v62  ;;  %v651_v60 = vld [vmem:[%s2376_s2 + $0x388] sm:$0xff] }
  0x27   :  { %1246 = vmatprep.mubr.msk.f32.mxu1 %vm1707_vm0, %v1708_v8  ;;  %v1628_v63 = vpack.c.bf16 %v651_v60, %v650_v53  ;;  %v744_v60 = vld [vmem:[%s2376_s2 + $0x420] sm:$0xff] }
  0x28   :  { %1512 = vmatpush3.bf16.msra.mxu0 %v1511_v6  ;;  %v382_v6 = vld [vmem:[%s2376_s2 + $0x210] sm:$0xff] }
  0x29   :  { %1536 = vmatpush3.bf16.msra.mxu1 %v1535_v10  ;;  %1513 = vmatprep.subr.bf16.mxu0 %v1706_v0  ;;  %v473_v10 = vld [vmem:[%s2376_s2 + $0x298] sm:$0xff]  ;;  %v1559_v11 = vpack.c.bf16 %v383_v7, %v382_v6  ;;  %v565_v6 = vld [vmem:[%s2376_s2 + $0x328] sm:$0xff]  ;;  %v654_v7 = vld [vmem:[%s2376_s2 + $0x3a0] sm:$0xff] }
  0x2a   :  { %1537 = vmatprep.subr.bf16.mxu1 %v1706_v0  ;;  %v1583_v12 = vpack.c.bf16 %v473_v10, %v472_v9 }
  0x2c   :  { %1515 = vmatpush3.bf16.msra.mxu0 %v1514_v17  ;;  %v474_v17 = vld [vmem:[%s2376_s2 + $0x2a0] sm:$0xff] }
  0x2d   :  { %1539 = vmatpush3.bf16.msra.mxu1 %v1538_v18  ;;  %1516 = vmatprep.subr.bf16.mxu0 %v1706_v0  ;;  %v475_v18 = vld [vmem:[%s2376_s2 + $0x2a8] sm:$0xff] }
  0x2e   :  { %1540 = vmatprep.subr.bf16.mxu1 %v1706_v0  ;;  %v1586_v20 = vpack.c.bf16 %v475_v18, %v474_v17  ;;  %v1637_v18 = vpack.c.bf16 %v657_v14, %v656_v13  ;;  %v841_v13 = vld [vmem:[%s2376_s2 + $0x4d8] sm:$0xff] }
  0x30   :  { %1518 = vmatpush3.bf16.msra.mxu0 %v1517_v23  ;;  %v476_v23 = vld [vmem:[%s2376_s2 + $0x2b0] sm:$0xff] }
  0x31   :  { %1542 = vmatpush3.bf16.msra.mxu1 %v1541_v24  ;;  %1519 = vmatprep.subr.bf16.mxu0 %v1706_v0  ;;  %v477_v24 = vld [vmem:[%s2376_s2 + $0x2b8] sm:$0xff] }
  0x32   :  { %1543 = vmatprep.subr.bf16.mxu1 %v1706_v0  ;;  %v1589_v26 = vpack.c.bf16 %v477_v24, %v476_v23  ;;  %v1640_v24 = vpack.c.bf16 %v659_v22, %v658_v21  ;;  %v843_v21 = vld [vmem:[%s2376_s2 + $0x4e8] sm:$0xff] }
  0x34   :  { %1521 = vmatpush3.bf16.msra.mxu0 %v1520_v32  ;;  %v1592_v32 = vpack.c.bf16 %v479_v30, %v478_v29  ;;  %v1643_v30 = vpack.c.bf16 %v661_v28, %v660_v27  ;;  %v845_v27 = vld [vmem:[%s2376_s2 + $0x4f8] sm:$0xff] }
  0x35   :  { %1545 = vmatpush3.bf16.msra.mxu1 %v1544_v33  ;;  %1522 = vmatprep.subr.bf16.mxu0 %v1706_v0  ;;  %v390_v33 = vld [vmem:[%s2376_s2 + $0x250] sm:$0xff] }
  0x36   :  { %1546 = vmatprep.subr.bf16.mxu1 %v1706_v0  ;;  %v1571_v38 = vpack.c.bf16 %v391_v34, %v390_v33  ;;  %v662_v33 = vld [vmem:[%s2376_s2 + $0x3e0] sm:$0xff]  ;;  %v663_v34 = vld [vmem:[%s2376_s2 + $0x3e8] sm:$0xff] }
  0x38   :  { %1524 = vmatpush3.bf16.msra.mxu0 %v1523_v40  ;;  %v1595_v40 = vpack.c.bf16 %v481_v37, %v480_v35  ;;  %v1646_v37 = vpack.c.bf16 %v663_v34, %v662_v33 }
  0x39   :  { %1548 = vmatpush3.bf16.msra.mxu1 %v1547_v41  ;;  %1525 = vmatprep.subr.bf16.mxu0 %v1706_v0  ;;  %v392_v41 = vld [vmem:[%s2376_s2 + $0x260] sm:$0xff] }
  0x3a   :  { %1549 = vmatprep.subr.bf16.mxu1 %v1706_v0  ;;  %v1574_v46 = vpack.c.bf16 %v393_v42, %v392_v41  ;;  %v664_v41 = vld [vmem:[%s2376_s2 + $0x3f0] sm:$0xff]  ;;  %v665_v42 = vld [vmem:[%s2376_s2 + $0x3f8] sm:$0xff] }
  0x3c   :  { %1527 = vmatpush3.bf16.msra.mxu0 %v1526_v47  ;;  %v1598_v47 = vpack.c.bf16 %v483_v45, %v482_v43  ;;  %v1649_v45 = vpack.c.bf16 %v665_v42, %v664_v41 }
  0x3d   :  { %1551 = vmatpush3.bf16.msra.mxu1 %v1550_v49  ;;  %1528 = vmatprep.subr.bf16.mxu0 %v1706_v0  ;;  %v395_v49 = vld [vmem:[%s2376_s2 + $0x278] sm:$0xff] }
  0x3e   :  { %1552 = vmatprep.subr.bf16.mxu1 %v1706_v0  ;;  %v1577_v55 = vpack.c.bf16 %v395_v49, %v394_v48  ;;  %v830_v48 = vld [vmem:[%s2376_s2 + $0x480] sm:$0xff]  ;;  %v831_v49 = vld [vmem:[%s2376_s2 + $0x488] sm:$0xff] }
  0x3f   :  { %v1676_v52 = vpack.c.bf16 %v831_v49, %v830_v48 }
  0x40   :  { %1530 = vmatpush3.bf16.msra.mxu0 %v1529_v59  ;;  %v561_v59 = vld [vmem:[%s2376_s2 + $0x308] sm:$0xff] }
  0x41   :  { %1554 = vmatpush3.bf16.msra.mxu1 %v1553_v61  ;;  %1555 = vmatprep.subr.bf16.mxu0 %v1706_v0  ;;  %v379_v61 = vmul.f32 %v378_v54, %v1859_v51  ;;  %v1604_v62 = vpack.c.bf16 %v561_v59, %v560_v57  ;;  %v652_v51 = vld [vmem:[%s2376_s2 + $0x390] sm:$0xff]  ;;  %v833_v57 = vld [vmem:[%s2376_s2 + $0x498] sm:$0xff] }
  0x42   :  { %1579 = vmatprep.subr.bf16.mxu1 %v1706_v0  ;;  %v742_v54 = vld [vmem:[%s2376_s2 + $0x410] sm:$0xff] }
  0x43   :  { %1212 = vmatmul.mubr.f32.vlgmr.msra.gmra.mrb[2].mxu0 %v199_v2  ;;  %v653_v2 = vld [vmem:[%s2376_s2 + $0x398] sm:$0xff] }
  0x44   :  { %1557 = vmatpush3.bf16.msra.mxu0 %v1556_v3  ;;  %1247 = vmatmul.mubr.f32.vlgmr.msra.gmra.mrb[2].mxu1 %v289_v4  ;;  %v1607_v3 = vpack.c.bf16 %v563_v1, %v562_v44  ;;  %v1631_v4 = vpack.c.bf16 %v653_v2, %v652_v51  ;;  %v746_v44 = vld [vmem:[%s2376_s2 + $0x430] sm:$0xff]  ;;  %v747_v1 = vld [vmem:[%s2376_s2 + $0x438] sm:$0xff] }
  0x45   :  { %1581 = vmatpush3.bf16.msra.mxu1 %v1580_v5  ;;  %1558 = vmatprep.subr.bf16.mxu0 %v1706_v0  ;;  %v564_v5 = vld [vmem:[%s2376_s2 + $0x320] sm:$0xff]  ;;  %v837_v51 = vld [vmem:[%s2376_s2 + $0x4b8] sm:$0xff]  ;;  %v1661_v2 = vpack.c.bf16 %v747_v1, %v746_v44 }
  0x46   :  { %1582 = vmatprep.subr.bf16.mxu1 %v1706_v0  ;;  %1281 = vmatprep.mubr.msk.f32.mxu0 %vm1707_vm0, %v1708_v8  ;;  %v1610_v9 = vpack.c.bf16 %v565_v6, %v564_v5  ;;  %v749_v5 = vld [vmem:[%s2376_s2 + $0x448] sm:$0xff]  ;;  %v838_v6 = vld [vmem:[%s2376_s2 + $0x4c0] sm:$0xff] }
  0x47   :  { %1316 = vmatprep.mubr.msk.f32.mxu1 %vm1707_vm0, %v1708_v8 }
  0x48   :  { %1560 = vmatpush3.bf16.msra.mxu0 %v1559_v11  ;;  %v566_v11 = vld [vmem:[%s2376_s2 + $0x330] sm:$0xff] }
  0x49   :  { %1584 = vmatpush3.bf16.msra.mxu1 %v1583_v12  ;;  %1561 = vmatprep.subr.bf16.mxu0 %v1706_v0  ;;  %v567_v12 = vld [vmem:[%s2376_s2 + $0x338] sm:$0xff] }
  0x4a   :  { %1585 = vmatprep.subr.bf16.mxu1 %v1706_v0  ;;  %v1613_v17 = vpack.c.bf16 %v567_v12, %v566_v11  ;;  %v751_v11 = vld [vmem:[%s2376_s2 + $0x458] sm:$0xff]  ;;  %v840_v12 = vld [vmem:[%s2376_s2 + $0x4d0] sm:$0xff] }
  0x4c   :  { %1563 = vmatpush3.bf16.msra.mxu0 %v1562_v19  ;;  %v568_v19 = vld [vmem:[%s2376_s2 + $0x340] sm:$0xff] }
  0x4d   :  { %1587 = vmatpush3.bf16.msra.mxu1 %v1586_v20  ;;  %1564 = vmatprep.subr.bf16.mxu0 %v1706_v0  ;;  %v569_v20 = vld [vmem:[%s2376_s2 + $0x348] sm:$0xff] }
  0x4e   :  { %1588 = vmatprep.subr.bf16.mxu1 %v1706_v0  ;;  %v1616_v23 = vpack.c.bf16 %v569_v20, %v568_v19  ;;  %v753_v19 = vld [vmem:[%s2376_s2 + $0x468] sm:$0xff]  ;;  %v842_v20 = vld [vmem:[%s2376_s2 + $0x4e0] sm:$0xff] }
  0x50   :  { %1566 = vmatpush3.bf16.msra.mxu0 %v1565_v25  ;;  %v570_v25 = vld [vmem:[%s2376_s2 + $0x350] sm:$0xff] }
  0x51   :  { %1590 = vmatpush3.bf16.msra.mxu1 %v1589_v26  ;;  %1567 = vmatprep.subr.bf16.mxu0 %v1706_v0  ;;  %v571_v26 = vld [vmem:[%s2376_s2 + $0x358] sm:$0xff] }
  0x52   :  { %1591 = vmatprep.subr.bf16.mxu1 %v1706_v0  ;;  %v1619_v29 = vpack.c.bf16 %v571_v26, %v570_v25  ;;  %v755_v25 = vld [vmem:[%s2376_s2 + $0x478] sm:$0xff]  ;;  %v844_v26 = vld [vmem:[%s2376_s2 + $0x4f0] sm:$0xff] }
  0x54   :  { %1569 = vmatpush3.bf16.msra.mxu0 %v1568_v31  ;;  %v572_v31 = vld [vmem:[%s2376_s2 + $0x360] sm:$0xff] }
  0x55   :  { %1593 = vmatpush3.bf16.msra.mxu1 %v1592_v32  ;;  %1570 = vmatprep.subr.bf16.mxu0 %v1706_v0  ;;  %v573_v32 = vld [vmem:[%s2376_s2 + $0x368] sm:$0xff] }
  0x56   :  { %1594 = vmatprep.subr.bf16.mxu1 %v1706_v0  ;;  %v1622_v35 = vpack.c.bf16 %v573_v32, %v572_v31 }
  0x58   :  { %1572 = vmatpush3.bf16.msra.mxu0 %v1571_v38  ;;  %v574_v38 = vld [vmem:[%s2376_s2 + $0x370] sm:$0xff] }
  0x59   :  { %1596 = vmatpush3.bf16.msra.mxu1 %v1595_v40  ;;  %1573 = vmatprep.subr.bf16.mxu0 %v1706_v0  ;;  %v575_v40 = vld [vmem:[%s2376_s2 + $0x378] sm:$0xff] }
  0x5a   :  { %1597 = vmatprep.subr.bf16.mxu1 %v1706_v0  ;;  %v1625_v43 = vpack.c.bf16 %v575_v40, %v574_v38 }
  0x5c   :  { %1575 = vmatpush3.bf16.msra.mxu0 %v1574_v46  ;;  %v740_v46 = vld [vmem:[%s2376_s2 + $0x400] sm:$0xff] }
  0x5d   :  { %1599 = vmatpush3.bf16.msra.mxu1 %v1598_v47  ;;  %1576 = vmatprep.subr.bf16.mxu0 %v1706_v0  ;;  %v741_v47 = vld [vmem:[%s2376_s2 + $0x408] sm:$0xff] }
  0x5e   :  { %1600 = vmatprep.subr.bf16.mxu1 %v1706_v0  ;;  %v1652_v50 = vpack.c.bf16 %v741_v47, %v740_v46 }
  0x60   :  { %1578 = vmatpush3.bf16.msra.mxu0 %v1577_v55  ;;  %v743_v55 = vld [vmem:[%s2376_s2 + $0x418] sm:$0xff] }
  0x61   :  { %1602 = vmatpush3.bf16.msra.mxu1 %v1601_v56  ;;  %1603 = vmatprep.subr.bf16.mxu0 %v1706_v0  ;;  %v832_v56 = vld [vmem:[%s2376_s2 + $0x490] sm:$0xff]  ;;  %v1655_v59 = vpack.c.bf16 %v743_v55, %v742_v54 }
  0x62   :  { %1627 = vmatprep.subr.bf16.mxu1 %v1706_v0  ;;  %v1679_v53 = vpack.c.bf16 %v833_v57, %v832_v56 }
  0x63   :  { %1282 = vmatmul.mubr.f32.vlgmr.msra.gmra.mrb[4].mxu0 %v379_v61  ;;  %v745_v61 = vld [vmem:[%s2376_s2 + $0x428] sm:$0xff] }
  0x64   :  { %1605 = vmatpush3.bf16.msra.mxu0 %v1604_v62  ;;  %1317 = vmatmul.mubr.f32.vlgmr.msra.gmra.mrb[4].mxu1 %v1912_v15  ;;  %v655_v15 = vld [vmem:[%s2376_s2 + $0x3a8] sm:$0xff]  ;;  %v1658_v62 = vpack.c.bf16 %v745_v61, %v744_v60 }
  0x65   :  { %1629 = vmatpush3.bf16.msra.mxu1 %v1628_v63  ;;  %1606 = vmatprep.subr.bf16.mxu0 %v1706_v0  ;;  %v1634_v10 = vpack.c.bf16 %v655_v15, %v654_v7  ;;  %v839_v7 = vld [vmem:[%s2376_s2 + $0x4c8] sm:$0xff] }
  0x66   :  { %1630 = vmatprep.subr.bf16.mxu1 %v1706_v0  ;;  %1351 = vmatprep.mubr.msk.f32.mxu0 %vm1707_vm0, %v1708_v8 }
  0x67   :  { %1386 = vmatprep.mubr.msk.f32.mxu1 %vm1707_vm0, %v1708_v8 }
  0x68   :  { %1608 = vmatpush3.bf16.msra.mxu0 %v1607_v3 }
  0x69   :  { %1632 = vmatpush3.bf16.msra.mxu1 %v1631_v4  ;;  %1609 = vmatprep.subr.bf16.mxu0 %v1706_v0  ;;  %v748_v4 = vld [vmem:[%s2376_s2 + $0x440] sm:$0xff] }
  0x6a   :  { %1633 = vmatprep.subr.bf16.mxu1 %v1706_v0  ;;  %v1664_v15 = vpack.c.bf16 %v749_v5, %v748_v4 }
  0x6c   :  { %1611 = vmatpush3.bf16.msra.mxu0 %v1610_v9  ;;  %v1688_v9 = vpack.c.bf16 %v839_v7, %v838_v6 }
  0x6d   :  { %1635 = vmatpush3.bf16.msra.mxu1 %v1634_v10  ;;  %1612 = vmatprep.subr.bf16.mxu0 %v1706_v0  ;;  %v750_v10 = vld [vmem:[%s2376_s2 + $0x450] sm:$0xff] }
  0x6e   :  { %1636 = vmatprep.subr.bf16.mxu1 %v1706_v0  ;;  %v1667_v14 = vpack.c.bf16 %v751_v11, %v750_v10 }
  0x70   :  { %1614 = vmatpush3.bf16.msra.mxu0 %v1613_v17  ;;  %v1691_v17 = vpack.c.bf16 %v841_v13, %v840_v12 }
  0x71   :  { %1638 = vmatpush3.bf16.msra.mxu1 %v1637_v18  ;;  %1615 = vmatprep.subr.bf16.mxu0 %v1706_v0  ;;  %v752_v18 = vld [vmem:[%s2376_s2 + $0x460] sm:$0xff] }
  0x72   :  { %1639 = vmatprep.subr.bf16.mxu1 %v1706_v0  ;;  %v1670_v22 = vpack.c.bf16 %v753_v19, %v752_v18 }
  0x74   :  { %1617 = vmatpush3.bf16.msra.mxu0 %v1616_v23  ;;  %v1694_v23 = vpack.c.bf16 %v843_v21, %v842_v20 }
  0x75   :  { %1641 = vmatpush3.bf16.msra.mxu1 %v1640_v24  ;;  %1618 = vmatprep.subr.bf16.mxu0 %v1706_v0  ;;  %v754_v24 = vld [vmem:[%s2376_s2 + $0x470] sm:$0xff] }
  0x76   :  { %1642 = vmatprep.subr.bf16.mxu1 %v1706_v0  ;;  %v1673_v28 = vpack.c.bf16 %v755_v25, %v754_v24 }
  0x78   :  { %1620 = vmatpush3.bf16.msra.mxu0 %v1619_v29  ;;  %v1697_v29 = vpack.c.bf16 %v845_v27, %v844_v26 }
  0x79   :  { %1644 = vmatpush3.bf16.msra.mxu1 %v1643_v30  ;;  %1621 = vmatprep.subr.bf16.mxu0 %v1706_v0 }
  0x7a   :  { %1645 = vmatprep.subr.bf16.mxu1 %v1706_v0 }
  0x7c   :  { %1623 = vmatpush3.bf16.msra.mxu0 %v1622_v35 }
  0x7d   :  { %1647 = vmatpush3.bf16.msra.mxu1 %v1646_v37  ;;  %1624 = vmatprep.subr.bf16.mxu0 %v1706_v0 }
  0x7e   :  { %1648 = vmatprep.subr.bf16.mxu1 %v1706_v0 }
  0x80   :  { %1626 = vmatpush3.bf16.msra.mxu0 %v1625_v43 }
  0x81   :  { %1650 = vmatpush3.bf16.msra.mxu1 %v1649_v45  ;;  %1651 = vmatprep.subr.bf16.mxu0 %v1706_v0 }
  0x82   :  { %1675 = vmatprep.subr.bf16.mxu1 %v1706_v0 }
  0x83   :  { %1352 = vmatmul.mubr.f32.vlgmr.msra.gmra.mrb[6].mxu0 %v1917_v16  ;;  %v834_v16 = vld [vmem:[%s2376_s2 + $0x4a0] sm:$0xff] }
  0x84   :  { %1653 = vmatpush3.bf16.msra.mxu0 %v1652_v50  ;;  %1387 = vmatmul.mubr.f32.vlgmr.msra.gmra.mrb[6].mxu1 %v1958_v36  ;;  %v835_v36 = vld [vmem:[%s2376_s2 + $0x4a8] sm:$0xff] }
  0x85   :  { %1677 = vmatpush3.bf16.msra.mxu1 %v1676_v52  ;;  %1654 = vmatprep.subr.bf16.mxu0 %v1706_v0  ;;  %v1682_v63 = vpack.c.bf16 %v835_v36, %v834_v16 }
  0x86   :  { %1678 = vmatprep.subr.bf16.mxu1 %v1706_v0  ;;  %1421 = vmatprep.mubr.msk.f32.mxu0 %vm1707_vm0, %v1708_v8 }
  0x87   :  { %1456 = vmatprep.mubr.msk.f32.mxu1 %vm1707_vm0, %v1708_v8  ;;  %v836_v8 = vld [vmem:[%s2376_s2 + $0x4b0] sm:$0xff] }
  0x88   :  { %1656 = vmatpush3.bf16.msra.mxu0 %v1655_v59  ;;  %v1685_v3 = vpack.c.bf16 %v837_v51, %v836_v8 }
  0x89   :  { %1680 = vmatpush3.bf16.msra.mxu1 %v1679_v53  ;;  %1657 = vmatprep.subr.bf16.mxu0 %v1706_v0  ;;  %v937_v53 = vld [vmem:[%s2379_s3] ss:$0 sm:$0xff] }
  0x8a   :  { %1681 = vmatprep.subr.bf16.mxu1 %v1706_v0 }
  0x8c   :  { %1659 = vmatpush3.bf16.msra.mxu0 %v1658_v62 }
  0x8d   :  { %1683 = vmatpush3.bf16.msra.mxu1 %v1682_v63  ;;  %1660 = vmatprep.subr.bf16.mxu0 %v1706_v0 }
  0x8e   :  { %1684 = vmatprep.subr.bf16.mxu1 %v1706_v0 }
  0x90   :  { %1662 = vmatpush3.bf16.msra.mxu0 %v1661_v2 }
  0x91   :  { %1686 = vmatpush3.bf16.msra.mxu1 %v1685_v3  ;;  %1663 = vmatprep.subr.bf16.mxu0 %v1706_v0 }
  0x92   :  { %1687 = vmatprep.subr.bf16.mxu1 %v1706_v0 }
  0x94   :  { %1665 = vmatpush3.bf16.msra.mxu0 %v1664_v15 }
  0x95   :  { %1689 = vmatpush3.bf16.msra.mxu1 %v1688_v9  ;;  %1666 = vmatprep.subr.bf16.mxu0 %v1706_v0 }
  0x96   :  { %1690 = vmatprep.subr.bf16.mxu1 %v1706_v0 }
  0x98   :  { %1668 = vmatpush3.bf16.msra.mxu0 %v1667_v14 }
  0x99   :  { %1692 = vmatpush3.bf16.msra.mxu1 %v1691_v17  ;;  %1669 = vmatprep.subr.bf16.mxu0 %v1706_v0 }
  0x9a   :  { %1693 = vmatprep.subr.bf16.mxu1 %v1706_v0 }
  0x9c   :  { %1671 = vmatpush3.bf16.msra.mxu0 %v1670_v22 }
  0x9d   :  { %1695 = vmatpush3.bf16.msra.mxu1 %v1694_v23  ;;  %1672 = vmatprep.subr.bf16.mxu0 %v1706_v0 }
  0x9e   :  { %1696 = vmatprep.subr.bf16.mxu1 %v1706_v0 }
  0xa0   :  { %1674 = vmatpush3.bf16.msra.mxu0 %v1673_v28 }
  0xa1   :  { %1698 = vmatpush3.bf16.msra.mxu1 %v1697_v29 }
  0xa3   :  { %1422 = vmatmul.mubr.f32.vlgmr.msra.gmra.mrb[8].mxu0 %v1968_v39 }
  0xa4   :  { %1457 = vmatmul.mubr.f32.vlgmr.msra.gmra.mrb[8].mxu1 %v2008_v58 }
  0xf6   :  { %v123_v30 = vpop.f32.mrb[0].mxu0 }
  0xf7   :  { %v1143_v31 = vpop.f32.mrb[1].mxu0  ;;  %v193_v32 = vpop.f32.mrb[0].mxu1 }
  0xf8   :  { %v194_v33 = vadd.f32 %v193_v32, %v123_v30  ;;  %v1178_v34 = vpop.f32.mrb[1].mxu1 }
 0x116   :  { %v282_v35 = vpop.f32.mrb[2].mxu0 }
 0x117   :  { %v286_v37 = vadd.f32 %v282_v35, %v194_v33  ;;  %v1213_v38 = vpop.f32.mrb[3].mxu0  ;;  %v372_v40 = vpop.f32.mrb[2].mxu1 }
 0x118   :  { %v1248_v41 = vpop.f32.mrb[3].mxu1 }
 0x119   :  { %v376_v42 = vadd.f32 %v372_v40, %v286_v37 }
 0x136   :  { %v462_v43 = vpop.f32.mrb[4].mxu0 }
 0x137   :  { %v466_v45 = vadd.f32 %v462_v43, %v376_v42  ;;  %v1283_v0 = vpop.f32.mrb[5].mxu0  ;;  %v552_v46 = vpop.f32.mrb[4].mxu1 }
 0x138   :  { %v1318_v47 = vpop.f32.mrb[5].mxu1 }
 0x139   :  { %v556_v48 = vadd.f32 %v552_v46, %v466_v45 }
 0x156   :  { %v642_v39 = vpop.f32.mrb[6].mxu0 }
 0x157   :  { %v646_v49 = vadd.f32 %v642_v39, %v556_v48  ;;  %v1353_v58 = vpop.f32.mrb[7].mxu0  ;;  %v732_v50 = vpop.f32.mrb[6].mxu1 }
 0x158   :  { %v1388_v52 = vpop.f32.mrb[7].mxu1 }
 0x159   :  { %v736_v54 = vadd.f32 %v732_v50, %v646_v49 }
 0x176   :  { %v822_v55 = vpop.f32.mrb[8].mxu0 }
 0x177   :  { %v826_v56 = vadd.f32 %v822_v55, %v736_v54  ;;  %v1423_v57 = vpop.f32.mrb[9].mxu0  ;;  %v912_v59 = vpop.f32.mrb[8].mxu1 }
 0x178   :  { %v1458_v60 = vpop.f32.mrb[9].mxu1 }
 0x179   :  { %v916_v61 = vadd.f32 %v912_v59, %v826_v56 }
 0x17b   :  { %v924_v16 = vadd.f32 %v937_v53, %v916_v61 }
 0x17d   :  { %v938_v36 = vmul.f32 -1.442695, %v924_v16 }
 0x17f   :  { %1702 = vpow2.f32 %v938_v36 }
 0x189   :  { %v1703_v62 = vpop.eup %1702 }
 0x18a   :  { %v928_v63 = vadd.f32 1.0, %v1703_v62 }
 0x18c   :  { %1704 = vrcp.f32 %v928_v63 }
 0x196   :  { %v1705_v44 = vpop.eup %1704 }
 0x197   :  { %932 = vst.msk [vmem:[%s2380_s4] sm:$0xff] %vm931_vm1, %v1705_v44 }

</bundles_post_ra>
